<compile_context>
chip_gen: v5e
topology: v5e:2x2
jax: 0.10.0
libtpu: 0.0.40
codegen_flags: <defaults>
</compile_context>

<pallas_src>
import functools

import jax
import jax.numpy as jnp
from jax import lax
from jax.experimental import pallas as pl
from jax.experimental.pallas import tpu as pltpu


def _fab_kernel(x_ref, y_ref, wx_ref, wy_ref, b_ref, vx_ref, vy_ref, o_ref,
                *, H, W):
    # x_ref, y_ref, o_ref : (1, H*W, D)  lane-dense (D on lanes)
    # wx_ref, wy_ref      : (D, 18)      3x3 taps folded into N; col = tap*2 + out_ch
    # b_ref               : (1, 2)
    # vx_ref, vy_ref      : (1, D)
    P = H * W
    NT = wx_ref.shape[1]                      # 18 = 9 taps * 2 output channels
    pad = ((W + 1 + 7) // 8) * 8              # zero-halo rows (>= W+1, sublane aligned)

    x = x_ref[0]                              # (P, D) -- each activation read once
    y = y_ref[0]

    # (1) Per-pixel projection onto all 9 taps x 2 output channels:
    #     one matmul per input (K = D, N = 18).  No concat of x/y needed.
    p = (jnp.dot(x, wx_ref[...], preferred_element_type=jnp.float32) +
         jnp.dot(y, wy_ref[...], preferred_element_type=jnp.float32))    # (P, 18) f32

    # (2) Shift-and-accumulate over the 3x3 window on the flat row-major grid.
    #     Zero halo along the flattened axis handles out-of-range rows; a
    #     column mask handles wrap-around of the +/-1 column shifts.
    zpad = jnp.zeros((pad, NT), jnp.float32)
    pp = jnp.concatenate([zpad, p, zpad], axis=0)                        # (P + 2*pad, 18)

    # Column index of every output pixel (computed once, hoisted out of the loop).
    wpos = lax.broadcasted_iota(jnp.int32, (H, W, 2), 1).reshape(P, 2)
    not_last_col = wpos != (W - 1)
    not_first_col = wpos != 0

    logits = jnp.zeros((P, 2), jnp.float32)
    for t in range(9):                        # static unroll; tiny (P, 2) adds
        oy, ox = t // 3 - 1, t % 3 - 1
        start = pad + oy * W + ox
        shifted = pp[start:start + P, 2 * t:2 * t + 2]                   # (P, 2)
        if ox == 1:
            shifted = jnp.where(not_last_col, shifted, 0.0)
        elif ox == -1:
            shifted = jnp.where(not_first_col, shifted, 0.0)
        logits = logits + shifted

    att = jax.nn.sigmoid(logits + b_ref[...])                            # (P, 2)
    a0 = att[:, 0:1]                                                     # broadcast once
    a1 = att[:, 1:2]

    xs = x.astype(jnp.float32) * vx_ref[...]                             # (P, D) * (1, D)
    ys = y.astype(jnp.float32) * vy_ref[...]
    o_ref[0] = (a0 * xs + a1 * ys).astype(o_ref.dtype)


def fab_forward(x, y, w, b, v_x, v_y):
    """x, y: (B, H, W, D); w: (2, 2*D, 3, 3) torch OIHW; b: (2,);
    v_x, v_y: (1, D, 1, 1) torch-style per-channel scales."""
    B, H, W, D = x.shape
    P = H * W
    NT = 18

    # One-time tiny parameter re-layout: per-input (D, 9*2), col = tap*2 + out_ch.
    wx = jnp.transpose(w[:, :D], (1, 2, 3, 0)).reshape(D, NT).astype(jnp.float32)
    wy = jnp.transpose(w[:, D:], (1, 2, 3, 0)).reshape(D, NT).astype(jnp.float32)
    b2 = b.reshape(1, 2).astype(jnp.float32)
    vx = v_x.reshape(1, D).astype(jnp.float32)
    vy = v_y.reshape(1, D).astype(jnp.float32)

    # Metadata-only reshape: fold H, W into one axis, keep D lane-dense.
    x2 = x.reshape(B, P, D)
    y2 = y.reshape(B, P, D)

    kernel = functools.partial(_fab_kernel, H=H, W=W)
    out = pl.pallas_call(
        kernel,
        out_shape=jax.ShapeDtypeStruct((B, P, D), x.dtype),
        grid_spec=pltpu.PrefetchScalarGridSpec(
            num_scalar_prefetch=0,
            grid=(B,),
            in_specs=[
                pl.BlockSpec((1, P, D), lambda i: (i, 0, 0)),
                pl.BlockSpec((1, P, D), lambda i: (i, 0, 0)),
                pl.BlockSpec((D, NT), lambda i: (0, 0)),
                pl.BlockSpec((D, NT), lambda i: (0, 0)),
                pl.BlockSpec((1, 2), lambda i: (0, 0)),
                pl.BlockSpec((1, D), lambda i: (0, 0)),
                pl.BlockSpec((1, D), lambda i: (0, 0)),
            ],
            out_specs=pl.BlockSpec((1, P, D), lambda i: (i, 0, 0)),
        ),
        compiler_params=pltpu.CompilerParams(
            dimension_semantics=("parallel",)),
    )(x2, y2, wx, wy, b2, vx, vy)
    return out.reshape(B, H, W, D)


def fab_reference(x, y, w, b, v_x, v_y):
    """Pure-JAX mirror of the PyTorch forward (NHWC in/out, NCHW inside)."""
    xt = jnp.transpose(x, (0, 3, 1, 2)).astype(jnp.float32)   # b d h w
    yt = jnp.transpose(y, (0, 3, 1, 2)).astype(jnp.float32)
    att = lax.conv_general_dilated(
        jnp.concatenate([xt, yt], axis=1), w.astype(jnp.float32),
        window_strides=(1, 1), padding="SAME",
        dimension_numbers=("NCHW", "OIHW", "NCHW"),
        precision=lax.Precision.HIGHEST)
    att = jax.nn.sigmoid(att + b[None, :, None, None])
    out = att[:, 0:1] * xt * v_x + att[:, 1:2] * yt * v_y
    return jnp.transpose(out, (0, 2, 3, 1)).astype(x.dtype)


if __name__ == "__main__":
    # Small but lane-dense shapes: in_dim == D chosen as a multiple of 128.
    B, H, W, D = 2, 8, 8, 128

    key = jax.random.PRNGKey(0)
    kx, ky, kw, kb, kvx, kvy = jax.random.split(key, 6)

    x = jax.random.normal(kx, (B, H, W, D), jnp.float32)
    y = jax.random.normal(ky, (B, H, W, D), jnp.float32)

    # nn.Conv2d(in=2D, out=2, kernel=3, padding=1) parameters (torch OIHW layout).
    w = jax.random.normal(kw, (2, 2 * D, 3, 3), jnp.float32) * 0.02
    b = jax.random.normal(kb, (2,), jnp.float32) * 0.1
    # nn.Parameter(torch.randn((1, in_dim, 1, 1)))
    v_x = jax.random.normal(kvx, (1, D, 1, 1), jnp.float32)
    v_y = jax.random.normal(kvy, (1, D, 1, 1), jnp.float32)

    out = jax.jit(fab_forward)(x, y, w, b, v_x, v_y)
    jax.block_until_ready(out)

    ref = fab_reference(x, y, w, b, v_x, v_y)
    assert out.shape == (B, H, W, D)
    assert jnp.allclose(out, ref, atol=2e-4, rtol=2e-4), "mismatch vs reference"

    print("KERNEL_OK")
</pallas_src>

<mosaic_0001>
module attributes {stable_mosaic.version = 11 : i64} {
  func.func @_fab_kernel(%arg0: i32, %arg1: memref<1x64x128xf32, #tpu.memory_space<vmem>>, %arg2: memref<1x64x128xf32, #tpu.memory_space<vmem>>, %arg3: memref<128x18xf32, #tpu.memory_space<vmem>>, %arg4: memref<128x18xf32, #tpu.memory_space<vmem>>, %arg5: memref<1x2xf32, #tpu.memory_space<vmem>>, %arg6: memref<1x128xf32, #tpu.memory_space<vmem>>, %arg7: memref<1x128xf32, #tpu.memory_space<vmem>>, %arg8: memref<1x64x128xf32, #tpu.memory_space<vmem>>) attributes {dimension_semantics = [#tpu.dimension_semantics<parallel>], iteration_bounds = array<i64: 2>, scalar_prefetch = 0 : i64, scratch_operands = 0 : i64, tpu.core_type = #tpu.core_type<tc>, window_params = [{transform_indices = @transform_0, window_bounds = array<i64: 1, 64, 128>}, {transform_indices = @transform_1, window_bounds = array<i64: 1, 64, 128>}, {pipeline_mode = #tpu.pipeline_mode<synchronous>, transform_indices = @transform_2, window_bounds = array<i64: 128, 18>}, {pipeline_mode = #tpu.pipeline_mode<synchronous>, transform_indices = @transform_3, window_bounds = array<i64: 128, 18>}, {pipeline_mode = #tpu.pipeline_mode<synchronous>, transform_indices = @transform_4, window_bounds = array<i64: 1, 2>}, {pipeline_mode = #tpu.pipeline_mode<synchronous>, transform_indices = @transform_5, window_bounds = array<i64: 1, 128>}, {pipeline_mode = #tpu.pipeline_mode<synchronous>, transform_indices = @transform_6, window_bounds = array<i64: 1, 128>}, {transform_indices = @transform_7, window_bounds = array<i64: 1, 64, 128>}]} {
    %c0 = arith.constant 0 : index
    %c0_0 = arith.constant 0 : index
    %c0_1 = arith.constant 0 : index
    %0 = vector.load %arg1[%c0, %c0_0, %c0_1] : memref<1x64x128xf32, #tpu.memory_space<vmem>>, vector<1x64x128xf32>
    %1 = vector.shape_cast %0 : vector<1x64x128xf32> to vector<64x128xf32>
    %c0_2 = arith.constant 0 : index
    %c0_3 = arith.constant 0 : index
    %c0_4 = arith.constant 0 : index
    %2 = vector.load %arg2[%c0_2, %c0_3, %c0_4] : memref<1x64x128xf32, #tpu.memory_space<vmem>>, vector<1x64x128xf32>
    %3 = vector.shape_cast %2 : vector<1x64x128xf32> to vector<64x128xf32>
    %c0_5 = arith.constant 0 : index
    %c0_6 = arith.constant 0 : index
    %4 = vector.load %arg3[%c0_5, %c0_6] : memref<128x18xf32, #tpu.memory_space<vmem>>, vector<128x18xf32>
    %cst = arith.constant dense<0.000000e+00> : vector<64x18xf32>
    %5 = tpu.matmul %1, %4, %cst {dimension_numbers = #tpu.dot_dimension_numbers<[1], [0], [0], [1], [0, 0, 1, 1], [], []>} : vector<64x128xf32>, vector<128x18xf32>, vector<64x18xf32> -> vector<64x18xf32>
    %c0_7 = arith.constant 0 : index
    %c0_8 = arith.constant 0 : index
    %6 = vector.load %arg4[%c0_7, %c0_8] : memref<128x18xf32, #tpu.memory_space<vmem>>, vector<128x18xf32>
    %cst_9 = arith.constant dense<0.000000e+00> : vector<64x18xf32>
    %7 = tpu.matmul %3, %6, %cst_9 {dimension_numbers = #tpu.dot_dimension_numbers<[1], [0], [0], [1], [0, 0, 1, 1], [], []>} : vector<64x128xf32>, vector<128x18xf32>, vector<64x18xf32> -> vector<64x18xf32>
    %8 = arith.addf %5, %7 : vector<64x18xf32>
    %cst_10 = arith.constant 0.000000e+00 : f32
    %9 = vector.broadcast %cst_10 : f32 to vector<16x18xf32>
    %10 = tpu.concatenate %9, %8, %9 in 0 : vector<16x18xf32>, vector<64x18xf32>, vector<16x18xf32> -> vector<96x18xf32>
    %11 = tpu.iota {dimensions = array<i32: 1>} : vector<8x8x2xi32>
    %12 = vector.shape_cast %11 : vector<8x8x2xi32> to vector<64x2xi32>
    %c7_i32 = arith.constant 7 : i32
    %13 = vector.broadcast %c7_i32 : i32 to vector<64x2xi32>
    %14 = arith.cmpi ne, %12, %13 : vector<64x2xi32>
    %c0_i32 = arith.constant 0 : i32
    %15 = vector.broadcast %c0_i32 : i32 to vector<64x2xi32>
    %16 = arith.cmpi ne, %12, %15 : vector<64x2xi32>
    %cst_11 = arith.constant 0.000000e+00 : f32
    %17 = vector.broadcast %cst_11 : f32 to vector<64x2xf32>
    %18 = vector.extract_strided_slice %10 {offsets = [7, 0], sizes = [64, 2], strides = [1, 1]} : vector<96x18xf32> to vector<64x2xf32>
    %cst_12 = arith.constant 0.000000e+00 : f32
    %19 = vector.broadcast %cst_12 : f32 to vector<64x2xf32>
    %20 = arith.select %16, %18, %19 : vector<64x2xi1>, vector<64x2xf32>
    %21 = arith.addf %17, %20 : vector<64x2xf32>
    %22 = vector.extract_strided_slice %10 {offsets = [8, 2], sizes = [64, 2], strides = [1, 1]} : vector<96x18xf32> to vector<64x2xf32>
    %23 = arith.addf %21, %22 : vector<64x2xf32>
    %24 = vector.extract_strided_slice %10 {offsets = [9, 4], sizes = [64, 2], strides = [1, 1]} : vector<96x18xf32> to vector<64x2xf32>
    %cst_13 = arith.constant 0.000000e+00 : f32
    %25 = vector.broadcast %cst_13 : f32 to vector<64x2xf32>
    %26 = arith.select %14, %24, %25 : vector<64x2xi1>, vector<64x2xf32>
    %27 = arith.addf %23, %26 : vector<64x2xf32>
    %28 = vector.extract_strided_slice %10 {offsets = [15, 6], sizes = [64, 2], strides = [1, 1]} : vector<96x18xf32> to vector<64x2xf32>
    %cst_14 = arith.constant 0.000000e+00 : f32
    %29 = vector.broadcast %cst_14 : f32 to vector<64x2xf32>
    %30 = arith.select %16, %28, %29 : vector<64x2xi1>, vector<64x2xf32>
    %31 = arith.addf %27, %30 : vector<64x2xf32>
    %32 = vector.extract_strided_slice %10 {offsets = [16, 8], sizes = [64, 2], strides = [1, 1]} : vector<96x18xf32> to vector<64x2xf32>
    %33 = arith.addf %31, %32 : vector<64x2xf32>
    %34 = vector.extract_strided_slice %10 {offsets = [17, 10], sizes = [64, 2], strides = [1, 1]} : vector<96x18xf32> to vector<64x2xf32>
    %cst_15 = arith.constant 0.000000e+00 : f32
    %35 = vector.broadcast %cst_15 : f32 to vector<64x2xf32>
    %36 = arith.select %14, %34, %35 : vector<64x2xi1>, vector<64x2xf32>
    %37 = arith.addf %33, %36 : vector<64x2xf32>
    %38 = vector.extract_strided_slice %10 {offsets = [23, 12], sizes = [64, 2], strides = [1, 1]} : vector<96x18xf32> to vector<64x2xf32>
    %cst_16 = arith.constant 0.000000e+00 : f32
    %39 = vector.broadcast %cst_16 : f32 to vector<64x2xf32>
    %40 = arith.select %16, %38, %39 : vector<64x2xi1>, vector<64x2xf32>
    %41 = arith.addf %37, %40 : vector<64x2xf32>
    %42 = vector.extract_strided_slice %10 {offsets = [24, 14], sizes = [64, 2], strides = [1, 1]} : vector<96x18xf32> to vector<64x2xf32>
    %43 = arith.addf %41, %42 : vector<64x2xf32>
    %44 = vector.extract_strided_slice %10 {offsets = [25, 16], sizes = [64, 2], strides = [1, 1]} : vector<96x18xf32> to vector<64x2xf32>
    %cst_17 = arith.constant 0.000000e+00 : f32
    %45 = vector.broadcast %cst_17 : f32 to vector<64x2xf32>
    %46 = arith.select %14, %44, %45 : vector<64x2xi1>, vector<64x2xf32>
    %47 = arith.addf %43, %46 : vector<64x2xf32>
    %c0_18 = arith.constant 0 : index
    %c0_19 = arith.constant 0 : index
    %48 = vector.load %arg5[%c0_18, %c0_19] : memref<1x2xf32, #tpu.memory_space<vmem>>, vector<1x2xf32>
    %49 = vector.broadcast %48 : vector<1x2xf32> to vector<64x2xf32>
    %50 = arith.addf %47, %49 : vector<64x2xf32>
    %51 = arith.negf %50 : vector<64x2xf32>
    %52 = math.exp %51 : vector<64x2xf32>
    %cst_20 = arith.constant 1.000000e+00 : f32
    %53 = vector.broadcast %cst_20 : f32 to vector<64x2xf32>
    %54 = arith.addf %53, %52 : vector<64x2xf32>
    %55 = arith.divf %53, %54 : vector<64x2xf32>
    %56 = vector.extract_strided_slice %55 {offsets = [0, 0], sizes = [64, 1], strides = [1, 1]} : vector<64x2xf32> to vector<64x1xf32>
    %57 = vector.extract_strided_slice %55 {offsets = [0, 1], sizes = [64, 1], strides = [1, 1]} : vector<64x2xf32> to vector<64x1xf32>
    %c0_21 = arith.constant 0 : index
    %c0_22 = arith.constant 0 : index
    %58 = vector.load %arg6[%c0_21, %c0_22] : memref<1x128xf32, #tpu.memory_space<vmem>>, vector<1x128xf32>
    %59 = vector.broadcast %58 : vector<1x128xf32> to vector<64x128xf32>
    %60 = arith.mulf %1, %59 : vector<64x128xf32>
    %c0_23 = arith.constant 0 : index
    %c0_24 = arith.constant 0 : index
    %61 = vector.load %arg7[%c0_23, %c0_24] : memref<1x128xf32, #tpu.memory_space<vmem>>, vector<1x128xf32>
    %62 = vector.broadcast %61 : vector<1x128xf32> to vector<64x128xf32>
    %63 = arith.mulf %3, %62 : vector<64x128xf32>
    %64 = vector.broadcast %56 : vector<64x1xf32> to vector<64x128xf32>
    %65 = arith.mulf %64, %60 : vector<64x128xf32>
    %66 = vector.broadcast %57 : vector<64x1xf32> to vector<64x128xf32>
    %67 = arith.mulf %66, %63 : vector<64x128xf32>
    %68 = arith.addf %65, %67 : vector<64x128xf32>
    %c0_25 = arith.constant 0 : index
    %c0_26 = arith.constant 0 : index
    %c0_27 = arith.constant 0 : index
    %69 = vector.load %arg8[%c0_25, %c0_26, %c0_27] : memref<1x64x128xf32, #tpu.memory_space<vmem>>, vector<1x64x128xf32>
    %70 = vector.shape_cast %69 : vector<1x64x128xf32> to vector<64x128xf32>
    %71 = vector.shape_cast %68 : vector<64x128xf32> to vector<1x64x128xf32>
    tpu.vector_store %arg8[%c0_25, %c0_26, %c0_27], %71 {strides = array<i32>} : memref<1x64x128xf32, #tpu.memory_space<vmem>>, vector<1x64x128xf32>,
    return
  }
  func.func @transform_0(%arg0: i32) -> (i32, i32, i32) {
    %c0_i32 = arith.constant 0 : i32
    %c0_i32_0 = arith.constant 0 : i32
    %c0_i32_1 = arith.constant 0 : i32
    return %arg0, %c0_i32, %c0_i32_0 : i32, i32, i32
  }
  func.func @transform_1(%arg0: i32) -> (i32, i32, i32) {
    %c0_i32 = arith.constant 0 : i32
    %c0_i32_0 = arith.constant 0 : i32
    %c0_i32_1 = arith.constant 0 : i32
    return %arg0, %c0_i32, %c0_i32_0 : i32, i32, i32
  }
  func.func @transform_2(%arg0: i32) -> (i32, i32) {
    %c0_i32 = arith.constant 0 : i32
    %c0_i32_0 = arith.constant 0 : i32
    %c0_i32_1 = arith.constant 0 : i32
    return %c0_i32, %c0_i32_0 : i32, i32
  }
  func.func @transform_3(%arg0: i32) -> (i32, i32) {
    %c0_i32 = arith.constant 0 : i32
    %c0_i32_0 = arith.constant 0 : i32
    %c0_i32_1 = arith.constant 0 : i32
    return %c0_i32, %c0_i32_0 : i32, i32
  }
  func.func @transform_4(%arg0: i32) -> (i32, i32) {
    %c0_i32 = arith.constant 0 : i32
    %c0_i32_0 = arith.constant 0 : i32
    %c0_i32_1 = arith.constant 0 : i32
    return %c0_i32, %c0_i32_0 : i32, i32
  }
  func.func @transform_5(%arg0: i32) -> (i32, i32) {
    %c0_i32 = arith.constant 0 : i32
    %c0_i32_0 = arith.constant 0 : i32
    %c0_i32_1 = arith.constant 0 : i32
    return %c0_i32, %c0_i32_0 : i32, i32
  }
  func.func @transform_6(%arg0: i32) -> (i32, i32) {
    %c0_i32 = arith.constant 0 : i32
    %c0_i32_0 = arith.constant 0 : i32
    %c0_i32_1 = arith.constant 0 : i32
    return %c0_i32, %c0_i32_0 : i32, i32
  }
  func.func @transform_7(%arg0: i32) -> (i32, i32, i32) {
    %c0_i32 = arith.constant 0 : i32
    %c0_i32_0 = arith.constant 0 : i32
    %c0_i32_1 = arith.constant 0 : i32
    return %arg0, %c0_i32, %c0_i32_0 : i32, i32, i32
  }
}

</mosaic_0001>

<bundles_post_ra>
// kernel: fab_forward.1
= control target key start
LH: loop header
LB: loop body
LE: loop exit
PB: predicated region body
PF: predicated region fallthrough
CT: control target
= control target key end

     0   :  { %12 = vsyncpa [#allocation3], 0  ;;  %s2156_s0 = inlined_call_operand.vmem [shape: f32[2,64,128], index: 0, kind: input, shape index: {}]   ;;  %s2157_s1 = inlined_call_operand.vmem [shape: f32[2,64,128], index: 1, kind: input, shape index: {}]   ;;  %s2158_s2 = inlined_call_operand.vmem [shape: f32[128,18], index: 2, kind: input, shape index: {}]   ;;  %s2159_s3 = inlined_call_operand.vmem [shape: f32[128,18], index: 3, kind: input, shape index: {}]   ;;  %s2160_s4 = inlined_call_operand.vmem [shape: f32[1,2], index: 4, kind: input, shape index: {}]   ;;  %s2161_s5 = inlined_call_operand.vmem [shape: f32[1,128], index: 5, kind: input, shape index: {}]   ;;  %s2162_s6 = inlined_call_operand.vmem [shape: f32[1,128], index: 6, kind: input, shape index: {}]   ;;  %s2163_s7 = inlined_call_operand.hbm [shape: f32[2,64,128], index: 7, kind: output, shape index: {}]  }
   0x1   :  { %14 = vsyncpa [#allocation3 + $0x1], 0  ;;  %s1461_s24 = smov 0   ;;  %s1463_s25 = smov 0  }
   0x2   :  { %s1465_s26 = smov 0   ;;  %s1467_s27 = smov 0  }
   0x3 LB: > { %s1482_s28 = sadd.s32 4294967295, %s1406_s27   ;;  %s1182_s29 = sadd.s32 4294967294, %s1406_s27   ;;  %s1406_s27 = sphi %s1467_s27, %s2171_s27   ;;  %s1402_s26 = sphi %s1465_s26, %s2170_s26   ;;  %s1398_s25 = sphi %s1463_s25, %s2169_s25   ;;  %s1394_s24 = sphi %s1461_s24, %s2168_s24  }
   0x4   : > { %s1486_s30 = sadd.s32 1, %s1406_s27   ;;  %s184_s8 = sadd.s32 1, %s1402_s26 }
   0x5   : > { %s181_s9 = ssub.s32 %s1406_s27, %s1486_s30  ;;  %p194_p0 = scmp.ne.s32.totalorder %s1402_s26, %s1398_s25 }
   0x6   : > { %p182_p1 = scmp.eq.s32.totalorder %s181_s9, 0  ;;  %p195_p2 = scmp.eq.s32.totalorder %s1482_s28, 1 }
   0x7   : > { %p200_p3 = scmp.ne.s32.totalorder %s1398_s25, %s1394_s24  ;;  %p201_p4 = scmp.eq.s32.totalorder %s1182_s29, 1 }
   0x8   : > { %s1497_s10 = scalar_select %p182_p1, %s1402_s26, %s184_s8  }
   0x9   : > { %p1499_p5 = por %p195_p2, %p194_p0  ;;  %p1503_p6 = por %p201_p4, %p200_p3 }
   0xa   : > { %p1185_p7 = scmp.ge.s32.totalorder %s1406_s27, 1  ;;  %p250_p8 = scmp.lt.s32.totalorder %s1406_s27, 3 }
   0xc   : > { %p251_p9 = pnand %p1185_p7, %p250_p8 }
   0xd   : > { %p287_p10 = scmp.lt.s32.totalorder (!%p251_p9), %s1482_s28, 1  ;;  %s1411_s14 = smov (!%p251_p9), 124  }
   0xe   : > { %254 = sbr.rel (%p251_p9) target bundleno = 632 (0x278), region = 48  ;;  %s1412_s15 = smov (!%p251_p9), 122  }
   0xf   : > { %s1413_s16 = smov (!%p251_p9), 120   ;;  %s1414_s17 = smov (!%p251_p9), 118  }
  0x10   : > { %s1415_s19 = smov (!%p251_p9), 116   ;;  %s1416_s20 = smov (!%p251_p9), 112  }
  0x11   : > { %s284_s8 = sand.u32 (!%p251_p9), 1, %s1398_s25  }
  0x13   : > { %v344_v0 = vld [vmem:[%s2159_s3 + $0x78] sm:$0xff]  ;;  %v343_v2 = vld [vmem:[%s2159_s3 + $0x70] sm:$0xff]  ;;  %v342_v4 = vld [vmem:[%s2159_s3 + $0x68] sm:$0xff]  ;;  %s1526_s23 = scalar_select %p287_p10, %s1482_s28, 1  ;;  %v1408_v60 = vmov 0.0   ;;  %vm513_vm0 = vcmask 1046528  }
  0x14   : > { %v328_v1 = vld [vmem:[%s2158_s2 + $0x78] sm:$0xff]  ;;  %345 = vmatpush.msra.mxu0 %v344_v0  ;;  %1207 = vmatpush.msra.mxu2 %v344_v0  ;;  %v327_v3 = vld [vmem:[%s2158_s2 + $0x70] sm:$0xff]  ;;  %v326_v5 = vld [vmem:[%s2158_s2 + $0x68] sm:$0xff]  ;;  %vm439_vm1 = vcmask 1040384  }
  0x15   : > { %386 = vmatpush.msra.mxu1 %v328_v1  ;;  %1223 = vmatpush.msra.mxu3 %v328_v1  ;;  %v341_v6 = vld [vmem:[%s2159_s3 + $0x60] sm:$0xff]  ;;  %v340_v8 = vld [vmem:[%s2159_s3 + $0x58] sm:$0xff]  ;;  %s1204_s18 = sshll.u32 %s1526_s23, 6  ;;  %v339_v10 = vld [vmem:[%s2159_s3 + $0x50] sm:$0xff]  ;;  %s1410_s23 = smov 114  }
  0x16   : > { %346 = vmatpush.msra.mxu0 %v343_v2  ;;  %1208 = vmatpush.msra.mxu2 %v343_v2  ;;  %v325_v7 = vld [vmem:[%s2158_s2 + $0x60] sm:$0xff]  ;;  %v324_v9 = vld [vmem:[%s2158_s2 + $0x58] sm:$0xff]  ;;  %v323_v11 = vld [vmem:[%s2158_s2 + $0x50] sm:$0xff]  ;;  %s1553_s13 = scalar_lea.vmem %s2157_s1, %s1204_s18  ;;  %s1564_s21 = scalar_lea.vmem %s2156_s0, %s1204_s18  ;;  %v1708_v2 = vrot.slane %v1408_v60, 1 }
  0x17   : > { %387 = vmatpush.msra.mxu1 %v327_v3  ;;  %1224 = vmatpush.msra.mxu3 %v327_v3  ;;  %v338_v12 = vld [vmem:[%s2159_s3 + $0x48] sm:$0xff]  ;;  %v337_v14 = vld [vmem:[%s2159_s3 + $0x40] sm:$0xff]  ;;  %v336_v21 = vld [vmem:[%s2159_s3 + $0x38] sm:$0xff]  ;;  %s1409_s18 = smov 126   ;;  %v1710_v3 = vrot.slane %v1408_v60, 7 }
  0x18   : > { %347 = vmatpush.msra.mxu0 %v342_v4  ;;  %1209 = vmatpush.msra.mxu2 %v342_v4  ;;  %v322_v13 = vld [vmem:[%s2158_s2 + $0x48] sm:$0xff]  ;;  %v1572_v15 = vld [vmem:[%s2162_s6] ss:$0 sm:$0xff]  ;;  %v320_v25 = vld [vmem:[%s2158_s2 + $0x38] sm:$0xff] }
  0x19   : > { %388 = vmatpush.msra.mxu1 %v326_v5  ;;  %1225 = vmatpush.msra.mxu3 %v326_v5  ;;  %v1575_v16 = vld [vmem:[%s1553_s13 + $0x20] sm:$0xff]  ;;  %v1600_v23 = vld [vmem:[%s1553_s13 + $0x28] sm:$0xff]  ;;  %v335_v28 = vld [vmem:[%s2159_s3 + $0x30] sm:$0xff] }
  0x1a   : > { %348 = vmatpush.msra.mxu0 %v341_v6  ;;  %1210 = vmatpush.msra.mxu2 %v341_v6  ;;  %v1580_v17 = vld [vmem:[%s2161_s5] ss:$0 sm:$0xff]  ;;  %v1587_v19 = vmul.f32 %v1572_v15, %v1575_v16  ;;  %v1603_v24 = vld [vmem:[%s1564_s21 + $0x28] sm:$0xff]  ;;  %v1610_v26 = vmul.f32 %v1572_v15, %v1600_v23  ;;  %v1620_v29 = vld [vmem:[%s1553_s13 + $0x10] sm:$0xff] }
  0x1b   : > { %389 = vmatpush.msra.mxu1 %v325_v7  ;;  %1226 = vmatpush.msra.mxu3 %v325_v7  ;;  %v321_v18 = vld [vmem:[%s2158_s2 + $0x40] sm:$0xff]  ;;  %v1614_v27 = vmul.f32 %v1580_v17, %v1603_v24  ;;  %v319_v30 = vld [vmem:[%s2158_s2 + $0x30] sm:$0xff]  ;;  %v1627_v31 = vmul.f32 %v1572_v15, %v1620_v29  ;;  %v334_v33 = vld [vmem:[%s2159_s3 + $0x28] sm:$0xff] }
  0x1c   : > { %349 = vmatpush.msra.mxu0 %v340_v8  ;;  %1211 = vmatpush.msra.mxu2 %v340_v8  ;;  %v1590_v20 = vld [vmem:[%s1564_s21 + $0x20] sm:$0xff]  ;;  %v1630_v32 = vld [vmem:[%s1564_s21 + $0x10] sm:$0xff]  ;;  %v318_v35 = vld [vmem:[%s2158_s2 + $0x28] sm:$0xff] }
  0x1d   : > { %390 = vmatpush.msra.mxu1 %v324_v9  ;;  %1227 = vmatpush.msra.mxu3 %v324_v9  ;;  %v1597_v22 = vmul.f32 %v1580_v17, %v1590_v20  ;;  %v1637_v34 = vmul.f32 %v1580_v17, %v1630_v32  ;;  %v333_v36 = vld [vmem:[%s2159_s3 + $0x20] sm:$0xff]  ;;  %v332_v38 = vld [vmem:[%s2159_s3 + $0x18] sm:$0xff]  ;;  %v331_v40 = vld [vmem:[%s2159_s3 + $0x10] sm:$0xff] }
  0x1e   : > { %350 = vmatpush.msra.mxu0 %v339_v10  ;;  %1212 = vmatpush.msra.mxu2 %v339_v10  ;;  %v317_v37 = vld [vmem:[%s2158_s2 + $0x20] sm:$0xff]  ;;  %v316_v39 = vld [vmem:[%s2158_s2 + $0x18] sm:$0xff]  ;;  %v315_v42 = vld [vmem:[%s2158_s2 + $0x10] sm:$0xff] }
  0x1f   : > { %391 = vmatpush.msra.mxu1 %v323_v11  ;;  %1228 = vmatpush.msra.mxu3 %v323_v11  ;;  %v308_v41 = vld [vmem:[%s1553_s13 + $0x18] sm:$0xff]  ;;  %v330_v43 = vld [vmem:[%s2159_s3 + $0x8] sm:$0xff]  ;;  %v311_v47 = vld [vmem:[%s1553_s13 + $0x30] sm:$0xff] }
  0x20   : > { %351 = vmatpush.msra.mxu0 %v338_v12  ;;  %1213 = vmatpush.msra.mxu2 %v338_v12  ;;  %v1665_v44 = vmul.f32 %v1572_v15, %v308_v41  ;;  %v300_v45 = vld [vmem:[%s1564_s21 + $0x18] sm:$0xff]  ;;  %v303_v48 = vld [vmem:[%s1564_s21 + $0x30] sm:$0xff]  ;;  %v314_v50 = vld [vmem:[%s2158_s2 + $0x8] sm:$0xff]  ;;  %v1678_v51 = vmul.f32 %v1572_v15, %v311_v47 }
  0x21   : > { %392 = vmatpush.msra.mxu1 %v322_v13  ;;  %1229 = vmatpush.msra.mxu3 %v322_v13  ;;  %v1669_v46 = vmul.f32 %v1580_v17, %v300_v45  ;;  %v312_v49 = vld [vmem:[%s1553_s13 + $0x38] sm:$0xff]  ;;  %v1681_v52 = vmul.f32 %v1580_v17, %v303_v48  ;;  %v329_v55 = vld [vmem:[%s2159_s3] sm:$0xff]  ;;  %v306_v61 = vld [vmem:[%s1553_s13 + $0x8] sm:$0xff] }
  0x22   : > { %352 = vmatpush.msra.mxu0 %v337_v14  ;;  %1214 = vmatpush.msra.mxu2 %v337_v14  ;;  %v1684_v53 = vmul.f32 %v1572_v15, %v312_v49  ;;  %v304_v54 = vld [vmem:[%s1564_s21 + $0x38] sm:$0xff]  ;;  %v313_v57 = vld [vmem:[%s2158_s2] sm:$0xff]  ;;  %v298_v62 = vld [vmem:[%s1564_s21 + $0x8] sm:$0xff] }
  0x23   : > { %393 = vmatpush.msra.mxu1 %v321_v18  ;;  %1230 = vmatpush.msra.mxu3 %v321_v18  ;;  %v1691_v56 = vmul.f32 %v1580_v17, %v304_v54  ;;  %v305_v58 = vld [vmem:[%s1553_s13] sm:$0xff] }
  0x24   : > { %353 = vmatpush.msra.mxu0 %v336_v21  ;;  %1215 = vmatpush.msra.mxu2 %v336_v21  ;;  %v297_v59 = vld [vmem:[%s1564_s21] sm:$0xff] }
  0x25   : > { %394 = vmatpush.msra.mxu1 %v320_v25  ;;  %1231 = vmatpush.msra.mxu3 %v320_v25 }
  0x26   : > { %354 = vmatpush.msra.mxu0 %v335_v28  ;;  %1216 = vmatpush.msra.mxu2 %v335_v28 }
  0x27   : > { %395 = vmatpush.msra.mxu1 %v319_v30  ;;  %1232 = vmatpush.msra.mxu3 %v319_v30 }
  0x28   : > { %355 = vmatpush.msra.mxu0 %v334_v33  ;;  %1217 = vmatpush.msra.mxu2 %v334_v33 }
  0x29   : > { %396 = vmatpush.msra.mxu1 %v318_v35  ;;  %1233 = vmatpush.msra.mxu3 %v318_v35 }
  0x2a   : > { %356 = vmatpush.msra.mxu0 %v333_v36  ;;  %1218 = vmatpush.msra.mxu2 %v333_v36 }
  0x2b   : > { %397 = vmatpush.msra.mxu1 %v317_v37  ;;  %1234 = vmatpush.msra.mxu3 %v317_v37 }
  0x2c   : > { %357 = vmatpush.msra.mxu0 %v332_v38  ;;  %1219 = vmatpush.msra.mxu2 %v332_v38 }
  0x2d   : > { %398 = vmatpush.msra.mxu1 %v316_v39  ;;  %1235 = vmatpush.msra.mxu3 %v316_v39 }
  0x2e   : > { %358 = vmatpush.msra.mxu0 %v331_v40  ;;  %1220 = vmatpush.msra.mxu2 %v331_v40 }
  0x2f   : > { %399 = vmatpush.msra.mxu1 %v315_v42  ;;  %1236 = vmatpush.msra.mxu3 %v315_v42 }
  0x30   : > { %359 = vmatpush.msra.mxu0 %v330_v43  ;;  %1221 = vmatpush.msra.mxu2 %v330_v43 }
  0x31   : > { %400 = vmatpush.msra.mxu1 %v314_v50  ;;  %1237 = vmatpush.msra.mxu3 %v314_v50 }
  0x32   : > { %360 = vmatpush.msra.mxu0 %v329_v55  ;;  %1222 = vmatpush.msra.mxu2 %v329_v55 }
  0x33   : > { %401 = vmatpush.msra.mxu1 %v313_v57  ;;  %1238 = vmatpush.msra.mxu3 %v313_v57 }
  0x34   : > { %361 = vmatmul.f32.vlgmr.msra.gmra.mxu0 %v305_v58  ;;  %373 = vmatmul.f32.vlgmr.msra.gmra.mxu2 %v1575_v16  ;;  %v427_v58 = vlaneseq }
  0x35   : > { %402 = vmatmul.f32.vlgmr.msra.gmra.mxu1 %v297_v59  ;;  %414 = vmatmul.f32.vlgmr.msra.gmra.mxu3 %v1590_v20 }
  0x36   : > { %480 = vrot.lane.b32.xlu0 %v1408_v60, %s1409_s18  ;;  %741 = vrot.lane.b32.xlu1 %v1408_v60, %s1410_s23 }
  0x3c   : > { %364 = vmatmul.f32.gmra.mxu0 %v306_v61  ;;  %376 = vmatmul.f32.gmra.mxu2 %v1600_v23 }
  0x3d   : > { %405 = vmatmul.f32.gmra.mxu1 %v298_v62  ;;  %417 = vmatmul.f32.gmra.mxu3 %v1603_v24  ;;  %v1813_v62 = vshrl.u32 %v427_v58, 7 }
  0x3f   : > { %vm430_vm2 = vcmp.ne.s32.totalorder %v1813_v62, 0  ;;  %vm429_vm3 = vcmp.ne.s32.totalorder %v1813_v62, 7 }
  0x44   : > { %367 = vmatmul.f32.gmra.mxu0 %v1620_v29  ;;  %379 = vmatmul.f32.gmra.mxu2 %v311_v47 }
  0x45   : > { %408 = vmatmul.f32.gmra.mxu1 %v1630_v32  ;;  %420 = vmatmul.f32.gmra.mxu3 %v303_v48 }
  0x4c   : > { %370 = vmatmul.f32.gmra.mxu0 %v308_v41  ;;  %382 = vmatmul.f32.gmra.mxu2 %v312_v49 }
  0x4d   : > { %411 = vmatmul.f32.gmra.mxu1 %v300_v45  ;;  %423 = vmatmul.f32.gmra.mxu3 %v304_v54 }
  0xa8   : > { %v481_v60 = vpop.permute.xlu0 %480 }
  0xb1   : > { %v362_v63 = vpop.f32.mrf.mxu0 }
  0xb2   : > { %v403_v0 = vpop.f32.mrf.mxu1 }
  0xb3   : > { %v404_v1 = vadd.f32 %v403_v0, %v362_v63  ;;  %v1818_v63 = vpop.permute.xlu1 %741 }
  0xb5   : > { %482 = vrot.lane.b32.xlu0 %v404_v1, %s1409_s18  ;;  %v515_v4 = vrot.slane %v404_v1, 1  ;;  %v442_v5 = vrot.slane %v404_v1, 7 }
  0xb7   : > { %v516_v6 = vsel %vm513_vm0, %v1708_v2, %v515_v4  ;;  %v1717_v7 = vsel %vm439_vm1, %v1710_v3, %v442_v5  ;;  %v374_v8 = vpop.f32.mrf.mxu2 }
  0xb8   : > { %531 = vrot.lane.b32.xlu2 %v516_v6, %s1411_s14  ;;  %573 = vrot.lane.b32.xlu1 %v1717_v7, %s1412_s15  ;;  %v415_v9 = vpop.f32.mrf.mxu3  ;;  %v465_v6 = vsel %vm430_vm2, %v1717_v7, 0.0 }
  0xb9   : > { %v1722_v10 = vadd.f32 %v415_v9, %v374_v8  ;;  %v365_v11 = vpop.f32.mrf.mxu0 }
  0xba   : > { %v406_v12 = vpop.f32.mrf.mxu1 }
  0xbb   : > { %v407_v13 = vadd.f32 %v406_v12, %v365_v11  ;;  %v450_v29 = vrot.slane %v1722_v10, 7  ;;  %v523_v33 = vrot.slane %v1722_v10, 1 }
  0xbd   : > { %613 = vrot.lane.b32.xlu0 %v404_v1, %s1413_s16  ;;  %v444_v14 = vrot.slane %v407_v13, 7  ;;  %v517_v16 = vrot.slane %v407_v13, 1 }
  0xbf   : > { %v1732_v15 = vsel %vm439_vm1, %v442_v5, %v444_v14  ;;  %v518_v17 = vsel %vm513_vm0, %v515_v4, %v517_v16  ;;  %v377_v18 = vpop.f32.mrf.mxu2 }
  0xc0   : > { %490 = vrot.lane.b32.xlu2 %v1722_v10, %s1409_s18  ;;  %621 = vrot.lane.b32.xlu1 %v1722_v10, %s1413_s16  ;;  %v418_v20 = vpop.f32.mrf.mxu3 }
  0xc1   : > { %v419_v21 = vadd.f32 %v418_v20, %v377_v18  ;;  %v368_v23 = vpop.f32.mrf.mxu0 }
  0xc2   : > { %v409_v24 = vpop.f32.mrf.mxu1 }
  0xc3   : > { %v1746_v25 = vadd.f32 %v409_v24, %v368_v23  ;;  %v452_v28 = vrot.slane %v419_v21, 7  ;;  %v525_v32 = vrot.slane %v419_v21, 1  ;;  %v466_v23 = vsel %vm430_vm2, %v1732_v15, 0.0 }
  0xc5   : > { %733 = vrot.lane.b32.xlu0 %v1722_v10, %s1410_s23  ;;  %v1755_v30 = vsel %vm439_vm1, %v450_v29, %v452_v28  ;;  %v526_v35 = vsel %vm513_vm0, %v523_v33, %v525_v32  ;;  %v446_v36 = vrot.slane %v1746_v25, 7  ;;  %v519_v38 = vrot.slane %v1746_v25, 1 }
  0xc7   : > { %v1771_v37 = vsel %vm439_vm1, %v444_v14, %v446_v36  ;;  %v520_v39 = vsel %vm513_vm0, %v517_v16, %v519_v38  ;;  %v380_v40 = vpop.f32.mrf.mxu2 }
  0xc8   : > { %575 = vrot.lane.b32.xlu2 %v1732_v15, %s1412_s15  ;;  %484 = vrot.lane.b32.xlu1 %v407_v13, %s1409_s18  ;;  %v421_v41 = vpop.f32.mrf.mxu3 }
  0xc9   : > { %v1783_v42 = vadd.f32 %v421_v41, %v380_v40  ;;  %v371_v43 = vpop.f32.mrf.mxu0 }
  0xca   : > { %v412_v45 = vpop.f32.mrf.mxu1 }
  0xcb   : > { %v413_v47 = vadd.f32 %v412_v45, %v371_v43  ;;  %v454_v48 = vrot.slane %v1783_v42, 7  ;;  %v527_v54 = vrot.slane %v1783_v42, 1 }
  0xcd   : > { %727 = vrot.lane.b32.xlu0 %v407_v13, %s1410_s23  ;;  %v1794_v49 = vsel %vm439_vm1, %v452_v28, %v454_v48  ;;  %v528_v55 = vsel %vm513_vm0, %v525_v32, %v527_v54  ;;  %v448_v59 = vrot.slane %v413_v47, 7  ;;  %v521_v0 = vrot.slane %v413_v47, 1 }
  0xcf   : > { %v1811_v61 = vsel %vm439_vm1, %v446_v36, %v448_v59  ;;  %v524_v4 = vsel %vm513_vm0, %v521_v0, %v523_v33  ;;  %v522_v8 = vsel %vm513_vm0, %v519_v38, %v521_v0 }
  0xd0   : > { %646 = vrot.lane.b32.xlu2 %v518_v17, %s1414_s17  ;;  %615 = vrot.lane.b32.xlu1 %v407_v13, %s1413_s16  ;;  %v1834_v13 = vsel %vm439_vm1, %v448_v59, %v450_v29  ;;  %v424_v18 = vpop.f32.mrf.mxu3 }
  0xd5   : > { %533 = vrot.lane.b32.xlu0 %v518_v17, %s1411_s14  ;;  %v383_v17 = vpop.f32.mrf.mxu2 }
  0xd6   : > { %v425_v20 = vadd.f32 %v424_v18, %v383_v17  ;;  %v1905_v18 = vld [vmem:[%s2160_s4] ss:$0 sm:$0xff] }
  0xd8   : > { %623 = vrot.lane.b32.xlu2 %v419_v21, %s1413_s16  ;;  %687 = vrot.lane.b32.xlu1 %v1732_v15, %s1415_s19  ;;  %v571_v28 = vrot.slane %v425_v20, 7  ;;  %v529_v33 = vrot.slane %v425_v20, 1  ;;  %v464_v15 = vsel %vm430_vm2, %v1710_v3, 0.0 }
  0xd9   : > { %v504_v40 = vadd.f32 %v481_v60, %v464_v15 }
  0xda   : > { %v572_v32 = vsel %vm439_vm1, %v454_v48, %v571_v28  ;;  %v530_v38 = vsel %vm513_vm0, %v527_v54, %v529_v33  ;;  %v645_v59 = vsel %vm513_vm0, %v529_v33, %v1708_v2 }
  0xdd   : > { %492 = vrot.lane.b32.xlu0 %v419_v21, %s1409_s18 }
  0xe0   : > { %617 = vrot.lane.b32.xlu2 %v1746_v25, %s1413_s16  ;;  %735 = vrot.lane.b32.xlu1 %v419_v21, %s1410_s23 }
  0xe5   : > { %583 = vrot.lane.b32.xlu0 %v1755_v30, %s1412_s15 }
  0xe8   : > { %695 = vrot.lane.b32.xlu2 %v1755_v30, %s1415_s19  ;;  %486 = vrot.lane.b32.xlu1 %v1746_v25, %s1409_s18 }
  0xed   : > { %654 = vrot.lane.b32.xlu0 %v526_v35, %s1414_s17 }
  0xf0   : > { %766 = vrot.lane.b32.xlu2 %v526_v35, %s1416_s20  ;;  %729 = vrot.lane.b32.xlu1 %v1746_v25, %s1410_s23 }
  0xf5   : > { %577 = vrot.lane.b32.xlu0 %v1771_v37, %s1412_s15 }
  0xf8   : > { %689 = vrot.lane.b32.xlu2 %v1771_v37, %s1415_s19  ;;  %541 = vrot.lane.b32.xlu1 %v526_v35, %s1411_s14 }
  0xfd   : > { %648 = vrot.lane.b32.xlu0 %v520_v39, %s1414_s17 }
 0x100   : > { %760 = vrot.lane.b32.xlu2 %v520_v39, %s1416_s20  ;;  %535 = vrot.lane.b32.xlu1 %v520_v39, %s1411_s14 }
 0x105   : > { %625 = vrot.lane.b32.xlu0 %v1783_v42, %s1413_s16 }
 0x108   : > { %737 = vrot.lane.b32.xlu2 %v1783_v42, %s1410_s23  ;;  %494 = vrot.lane.b32.xlu1 %v1783_v42, %s1409_s18 }
 0x10d   : > { %619 = vrot.lane.b32.xlu0 %v413_v47, %s1413_s16 }
 0x110   : > { %488 = vrot.lane.b32.xlu2 %v413_v47, %s1409_s18  ;;  %585 = vrot.lane.b32.xlu1 %v1794_v49, %s1412_s15 }
 0x112   : > { %v1799_v50 = vpop.permute.xlu2 %531 }
 0x113   : > { %v555_v42 = vsel %vm429_vm3, %v1799_v50, 0.0  ;;  %v470_v50 = vsel %vm430_vm2, %v1755_v30, 0.0 }
 0x114   : > { %v563_v58 = vadd.f32 %v555_v42, %v504_v40 }
 0x115   : > { %697 = vrot.lane.b32.xlu0 %v1794_v49, %s1415_s19 }
 0x118   : > { %731 = vrot.lane.b32.xlu2 %v413_v47, %s1410_s23  ;;  %656 = vrot.lane.b32.xlu1 %v528_v55, %s1414_s17 }
 0x11a   : > { %v1807_v57 = vpop.permute.xlu2 %490 }
 0x11d   : > { %768 = vrot.lane.b32.xlu0 %v528_v55, %s1416_s20 }
 0x120   : > { %543 = vrot.lane.b32.xlu2 %v528_v55, %s1411_s14  ;;  %579 = vrot.lane.b32.xlu1 %v1811_v61, %s1412_s15 }
 0x122   : > { %v576_v1 = vpop.permute.xlu2 %575 }
 0x123   : > { %v598_v45 = vsel %vm430_vm2, %v576_v1, 0.0 }
 0x125   : > { %539 = vrot.lane.b32.xlu0 %v524_v4, %s1411_s14 }
 0x127   : > { %v483_v5 = vpop.permute.xlu0 %482 }
 0x128   : > { %v505_v9 = vadd.f32 %v483_v5, %v465_v6  ;;  %537 = vrot.lane.b32.xlu2 %v522_v8, %s1411_s14  ;;  %650 = vrot.lane.b32.xlu1 %v522_v8, %s1414_s17 }
 0x12a   : > { %v647_v11 = vpop.permute.xlu2 %646  ;;  %v574_v12 = vpop.permute.xlu1 %573 }
 0x12b   : > { %v597_v54 = vsel %vm430_vm2, %v574_v12, 0.0  ;;  %v670_v12 = vsel %vm429_vm3, %v647_v11, 0.0  ;;  %v467_v11 = vsel %vm430_vm2, %v1771_v37, 0.0 }
 0x12c   : > { %v605_v0 = vadd.f32 %v597_v54, %v563_v58 }
 0x12d   : > { %691 = vrot.lane.b32.xlu0 %v1811_v61, %s1415_s19 }
 0x12f   : > { %v614_v14 = vpop.permute.xlu0 %613 }
 0x130   : > { %581 = vrot.lane.b32.xlu2 %v1834_v13, %s1412_s15  ;;  %693 = vrot.lane.b32.xlu1 %v1834_v13, %s1415_s19  ;;  %v637_v5 = vadd.f32 %v614_v14, %v605_v0 }
 0x132   : > { %v1840_v7 = vpop.permute.xlu2 %623  ;;  %v1842_v16 = vpop.permute.xlu1 %621  ;;  %v678_v17 = vadd.f32 %v670_v12, %v637_v5 }
 0x135   : > { %762 = vrot.lane.b32.xlu0 %v522_v8, %s1416_s20 }
 0x137   : > { %v1845_v10 = vpop.permute.xlu0 %733 }
 0x138   : > { %652 = vrot.lane.b32.xlu2 %v524_v4, %s1414_s17  ;;  %764 = vrot.lane.b32.xlu1 %v524_v4, %s1416_s20  ;;  %v686_v4 = vsel %vm439_vm1, %v571_v28, %v1710_v3 }
 0x13a   : > { %v1849_v21 = vpop.permute.xlu2 %617  ;;  %v485_v24 = vpop.permute.xlu1 %484 }
 0x13b   : > { %v1854_v25 = vadd.f32 %v485_v24, %v466_v23 }
 0x13d   : > { %739 = vrot.lane.b32.xlu0 %v425_v20, %s1410_s23 }
 0x13f   : > { %v728_v29 = vpop.permute.xlu0 %727 }
 0x140   : > { %587 = vrot.lane.b32.xlu2 %v572_v32, %s1412_s15  ;;  %627 = vrot.lane.b32.xlu1 %v425_v20, %s1413_s16  ;;  %s1186_s15 = sshll.u32 %s284_s8, 6 }
 0x141   : > { %s2098_s16 = scalar_lea.vmem [#allocation2], %s1186_s15 }
 0x142   : > { %v1860_v35 = vpop.permute.xlu2 %695  ;;  %v616_v36 = vpop.permute.xlu1 %615 }
 0x145   : > { %545 = vrot.lane.b32.xlu0 %v530_v38, %s1411_s14  ;;  %s1364_s14 = scalar_lea.hbm %s2163_s7, 128 }
 0x147   : > { %v534_v39 = vpop.permute.xlu0 %533 }
 0x148   : > { %v556_v41 = vsel %vm429_vm3, %v534_v39, 0.0  ;;  %658 = vrot.lane.b32.xlu2 %v530_v38, %s1414_s17  ;;  %699 = vrot.lane.b32.xlu1 %v572_v32, %s1415_s19  ;;  %v1417_v32 = vmov 0  }
 0x149   : > { %v564_v43 = vadd.f32 %v556_v41, %v505_v9  ;;  %1291 = vset.pattern.permute.xlu1 %v1417_v32  ;;  %1293 = vset.pattern.permute.xlu2 %v1417_v32  ;;  %v469_v41 = vsel %vm430_vm2, %v1834_v13, 0.0 }
 0x14a   : > { %v1877_v47 = vpop.permute.xlu2 %766  ;;  %v688_v48 = vpop.permute.xlu1 %687  ;;  %1295 = vset.pattern.permute.xlu0 %v1417_v32 }
 0x14b   : > { %v606_v55 = vadd.f32 %v598_v45, %v564_v43  ;;  %v711_v30 = vsel %vm430_vm2, %v688_v48, 0.0  ;;  %v509_v43 = vadd.f32 %v1807_v57, %v469_v41 }
 0x14c   : > { %v719_v3 = vadd.f32 %v711_v30, %v678_v17 }
 0x14d   : > { %660 = vrot.lane.b32.xlu0 %v645_v59, %s1414_s17  ;;  %v638_v60 = vadd.f32 %v616_v36, %v606_v55 }
 0x14e   : > { %v751_v23 = vadd.f32 %v728_v29, %v719_v3 }
 0x14f   : > { %v493_v1 = vpop.permute.xlu0 %492 }
 0x150   : > { %v1889_v6 = vadd.f32 %v493_v1, %v470_v50  ;;  %701 = vrot.lane.b32.xlu2 %v686_v4, %s1415_s19  ;;  %770 = vrot.lane.b32.xlu1 %v530_v38, %s1416_s20 }
 0x152   : > { %v690_v8 = vpop.permute.xlu2 %689  ;;  %v1893_v9 = vpop.permute.xlu1 %735 }
 0x153   : > { %v712_v4 = vsel %vm430_vm2, %v690_v8, 0.0 }
 0x155   : > { %774 = vrot.lane.b32.xlu0 %v1708_v2, %s1416_s20 }
 0x157   : > { %v584_v14 = vpop.permute.xlu0 %583 }
 0x158   : > { %772 = vrot.lane.b32.xlu2 %v645_v59, %s1416_s20  ;;  %v602_v58 = vsel %vm430_vm2, %v584_v14, 0.0  ;;  %s1105_s20 = sshll.u32 %s2098_s16, 4  ;;  %s1106_s20 = int_to_ptr.vmem [resolvable:$true] %s1105_s20 }
 0x15a   : > { %v761_v20 = vpop.permute.xlu2 %760  ;;  %v487_v24 = vpop.permute.xlu1 %486 }
 0x15b   : > { %v784_v28 = vsel %vm429_vm3, %v761_v20, 0.0  ;;  %v1912_v2 = vadd.f32 %v487_v24, %v467_v11 }
 0x15c   : > { %v792_v33 = vadd.f32 %v784_v28, %v751_v23 }
 0x15e   : > { %v804_v29 = vadd.f32 %v1905_v18, %v792_v33 }
 0x15f   : > { %v1918_v36 = vpop.permute.xlu0 %654 }
 0x160   : > { %v1191_v38 = vmul.f32 -1.442695, %v804_v29 }
 0x162   : > { %1306 = vpow2.f32 %v1191_v38  ;;  %v1920_v37 = vpop.permute.xlu2 %737  ;;  %v730_v15 = vpop.permute.xlu1 %729 }
 0x167   : > { %v578_v39 = vpop.permute.xlu0 %577 }
 0x168   : > { %v1307_v40 = vpop.eup %1306  ;;  %v599_v23 = vsel %vm430_vm2, %v578_v39, 0.0 }
 0x169   : > { %v836_v42 = vadd.f32 1.0, %v1307_v40 }
 0x16a   : > { %v1926_v45 = vpop.permute.xlu2 %488  ;;  %v542_v48 = vpop.permute.xlu1 %541 }
 0x16b   : > { %1308 = vrcp.f32 %v836_v42  ;;  %v560_v54 = vsel %vm429_vm3, %v542_v48, 0.0  ;;  %v853_v8 = vand.u32 2147483647, %v836_v42  ;;  %vm849_vm5 = vweird.f32 %v836_v42 }
 0x16c   : > { %v568_v55 = vadd.f32 %v560_v54, %v509_v43 }
 0x16d   : > { %vm854_vm7 = vcmp.eq.f32.partialorder %v853_v8, 8.507059e+37 }
 0x16e   : > { %v610_v59 = vadd.f32 %v602_v58, %v568_v55  ;;  %v1418_v58 = vmov 1  }
 0x16f   : > { %v649_v0 = vpop.permute.xlu0 %648 }
 0x170   : > { %v671_v50 = vsel %vm429_vm3, %v649_v0, 0.0  ;;  %v642_v13 = vadd.f32 %v1840_v7, %v610_v59  ;;  %v855_v7 = vand.u32 2147483648, %v836_v42 }
 0x171   : > { %v1309_v1 = vpop.eup %1308  ;;  %v679_v57 = vadd.f32 %v671_v50, %v638_v60 }
 0x172   : > { %v1937_v5 = vpop.permute.xlu2 %731  ;;  %v536_v12 = vpop.permute.xlu1 %535  ;;  %v845_v30 = vmul.f32 %v1309_v1, %v836_v42  ;;  %vm850_vm4 = vweird.f32 %v1309_v1  ;;  %v856_v38 = vor.u32 1.1754944e-38, %v855_v7 }
 0x173   : > { %v720_v17 = vadd.f32 %v712_v4, %v679_v57  ;;  %v557_v3 = vsel %vm429_vm3, %v536_v12, 0.0  ;;  %vm851_vm6 = vmor %vm849_vm5, %vm850_vm4 }
 0x174   : > { %v565_v14 = vadd.f32 %v557_v3, %v1854_v25  ;;  %v846_v20 = vsub.f32 1.0, %v845_v30 }
 0x175   : > { %v1944_v11 = vadd.f32 %v730_v15, %v720_v17 }
 0x176   : > { %v607_v60 = vadd.f32 %v599_v23, %v565_v14  ;;  %v847_v24 = vmul.f32 %v1309_v1, %v846_v20 }
 0x177   : > { %v626_v28 = vpop.permute.xlu0 %625 }
 0x178   : > { %v848_v33 = vadd.f32 %v1309_v1, %v847_v24  ;;  %v639_v29 = vadd.f32 %v1849_v21, %v607_v60  ;;  %v468_v60 = vsel %vm430_vm2, %v1811_v61, 0.0 }
 0x179   : > { %v508_v8 = vadd.f32 %v1926_v45, %v468_v60  ;;  %v715_v45 = vsel %vm430_vm2, %v1860_v35, 0.0 }
 0x17a   : > { %v544_v40 = vpop.permute.xlu2 %543  ;;  %v1947_v25 = vpop.permute.xlu1 %494  ;;  %v852_v41 = vsel %vm851_vm6, %v1309_v1, %v848_v33 }
 0x17b   : > { %v857_v39 = vsel %vm854_vm7, %v856_v38, %v852_v41  ;;  %v561_v15 = vsel %vm429_vm3, %v544_v40, 0.0 }
 0x17c   : > { %990 = vperm.xlu1 %1291, %v857_v39   ;;  %v569_v48 = vadd.f32 %v561_v15, %v1889_v6 }
 0x17f   : > { %v620_v43 = vpop.permute.xlu0 %619 }
 0x182   : > { %v538_v54 = vpop.permute.xlu2 %537  ;;  %v586_v55 = vpop.permute.xlu1 %585 }
 0x183   : > { %v603_v21 = vsel %vm430_vm2, %v586_v55, 0.0  ;;  %v558_v30 = vsel %vm429_vm3, %v538_v54, 0.0 }
 0x184   : > { %v611_v42 = vadd.f32 %v603_v21, %v569_v48  ;;  %1292 = vset.pattern.permute.xlu1 %v1418_v58  ;;  %v566_v14 = vadd.f32 %v558_v30, %v1912_v2 }
 0x185   : > { %1037 = vperm.xlu1 %1292, %v857_v39   ;;  %v674_v39 = vsel %vm429_vm3, %v1918_v36, 0.0 }
 0x186   : > { %v1955_v59 = vadd.f32 %v626_v28, %v611_v42 }
 0x187   : > { %v698_v0 = vpop.permute.xlu0 %697 }
 0x188   : > { %v716_v6 = vsel %vm430_vm2, %v698_v0, 0.0 }
 0x18a   : > { %v582_v50 = vpop.permute.xlu2 %581  ;;  %v657_v1 = vpop.permute.xlu1 %656 }
 0x18b   : > { %v675_v57 = vsel %vm429_vm3, %v657_v1, 0.0  ;;  %v601_v2 = vsel %vm430_vm2, %v582_v50, 0.0 }
 0x18c   : > { %v683_v4 = vadd.f32 %v675_v57, %v642_v13 }
 0x18d   : > { %1296 = vset.pattern.permute.xlu1 %v1417_v32 }
 0x18e   : > { %v724_v12 = vadd.f32 %v716_v6, %v683_v4 }
 0x18f   : > { %v769_v17 = vpop.permute.xlu0 %768 }
 0x190   : > { %v1965_v3 = vadd.f32 %v1920_v37, %v724_v12  ;;  %v788_v35 = vsel %vm429_vm3, %v769_v17, 0.0  ;;  %v787_v12 = vsel %vm429_vm3, %v1877_v47, 0.0 }
 0x192   : > { %v580_v20 = vpop.permute.xlu1 %579  ;;  %v653_v13 = vpop.permute.xlu2 %652 }
 0x193   : > { %v600_v23 = vsel %vm430_vm2, %v580_v20, 0.0  ;;  %v673_v48 = vsel %vm429_vm3, %v653_v13, 0.0 }
 0x194   : > { %v608_v7 = vadd.f32 %v600_v23, %v566_v14 }
 0x196   : > { %v640_v24 = vadd.f32 %v620_v43, %v608_v7 }
 0x197   : > { %v540_v28 = vpop.permute.xlu0 %539 }
 0x198   : > { %v559_v37 = vsel %vm429_vm3, %v540_v28, 0.0  ;;  %v681_v21 = vadd.f32 %v673_v48, %v640_v24 }
 0x199   : > { %v567_v33 = vadd.f32 %v559_v37, %v508_v8 }
 0x19a   : > { %v651_v38 = vpop.permute.xlu1 %650  ;;  %v588_v61 = vpop.permute.xlu2 %587 }
 0x19b   : > { %v609_v40 = vadd.f32 %v601_v2, %v567_v33  ;;  %v672_v55 = vsel %vm429_vm3, %v651_v38, 0.0 }
 0x19c   : > { %v680_v50 = vadd.f32 %v672_v55, %v639_v29 }
 0x19d   : > { %v641_v41 = vadd.f32 %v1842_v16, %v609_v40 }
 0x19f   : > { %v682_v15 = vadd.f32 %v674_v39, %v641_v41  ;;  %v692_v43 = vpop.permute.xlu0 %691 }
 0x1a0   : > { %v713_v36 = vsel %vm430_vm2, %v692_v43, 0.0 }
 0x1a1   : > { %v723_v54 = vadd.f32 %v715_v45, %v682_v15  ;;  %v721_v4 = vadd.f32 %v713_v36, %v680_v50 }
 0x1a2   : > { %v694_v16 = vpop.permute.xlu1 %693  ;;  %v659_v30 = vpop.permute.xlu2 %658 }
 0x1a3   : > { %v755_v42 = vadd.f32 %v1893_v9, %v723_v54  ;;  %v714_v0 = vsel %vm430_vm2, %v694_v16, 0.0  ;;  %v753_v29 = vadd.f32 %v1937_v5, %v721_v4  ;;  %v471_v5 = vsel %vm430_vm2, %v1794_v49, 0.0 }
 0x1a4   : > { %v722_v1 = vadd.f32 %v714_v0, %v681_v21  ;;  %v511_v41 = vadd.f32 %v1947_v25, %v471_v5  ;;  %v676_v39 = vsel %vm429_vm3, %v659_v30, 0.0  ;;  %v604_v49 = vsel %vm430_vm2, %v588_v61, 0.0 }
 0x1a5   : > { %v796_v57 = vadd.f32 %v788_v35, %v755_v42  ;;  %v684_v21 = vadd.f32 %v676_v39, %v1955_v59 }
 0x1a6   : > { %v754_v6 = vadd.f32 %v1845_v10, %v722_v1 }
 0x1a7   : > { %v763_v9 = vpop.permute.xlu0 %762  ;;  %v808_v23 = vadd.f32 %v1905_v18, %v796_v57 }
 0x1a8   : > { %v795_v14 = vadd.f32 %v787_v12, %v754_v6  ;;  %v785_v20 = vsel %vm429_vm3, %v763_v9, 0.0 }
 0x1a9   : > { %v793_v17 = vadd.f32 %v785_v20, %v1944_v11  ;;  %v1195_v47 = vmul.f32 -1.442695, %v808_v23 }
 0x1aa   : > { %v765_v13 = vpop.permute.xlu1 %764  ;;  %v702_v33 = vpop.permute.xlu2 %701  ;;  %v807_v48 = vadd.f32 %v1905_v18, %v795_v14 }
 0x1ab   : > { %v805_v7 = vadd.f32 %v1905_v18, %v793_v17  ;;  %v786_v10 = vsel %vm429_vm3, %v765_v13, 0.0 }
 0x1ac   : > { %v794_v60 = vadd.f32 %v786_v10, %v753_v29  ;;  %v1194_v50 = vmul.f32 -1.442695, %v807_v48  ;;  %v718_v29 = vsel %vm430_vm2, %v702_v33, 0.0 }
 0x1ad   : > { %v1192_v24 = vmul.f32 -1.442695, %v805_v7 }
 0x1ae   : > { %v806_v8 = vadd.f32 %v1905_v18, %v794_v60 }
 0x1af   : > { %1310 = vpow2.f32 %v1192_v24  ;;  %v740_v28 = vpop.permute.xlu0 %739 }
 0x1b0   : > { %v1193_v37 = vmul.f32 -1.442695, %v806_v8  ;;  %1312 = vpow2.f32 %v1195_v47 }
 0x1b2   : > { %1314 = vpow2.f32 %v1193_v37  ;;  %v628_v11 = vpop.permute.xlu1 %627  ;;  %v773_v0 = vpop.permute.xlu2 %772 }
 0x1b3   : > { %v790_v61 = vsel %vm429_vm3, %v773_v0, 0.0 }
 0x1b5   : > { %v1311_v2 = vpop.eup %1310 }
 0x1b6   : > { %v837_v38 = vadd.f32 1.0, %v1311_v2  ;;  %v1313_v40 = vpop.eup %1312 }
 0x1b7   : > { %v546_v15 = vpop.permute.xlu0 %545  ;;  %v2023_v16 = vadd.f32 1.0, %v1313_v40 }
 0x1b8   : > { %v1315_v43 = vpop.eup %1314  ;;  %1316 = vrcp.f32 %v837_v38  ;;  %v562_v45 = vsel %vm429_vm3, %v546_v15, 0.0  ;;  %v868_v30 = vand.u32 2147483647, %v837_v38  ;;  %v870_v17 = vand.u32 2147483648, %v837_v38 }
 0x1b9   : > { %v2018_v54 = vadd.f32 1.0, %v1315_v43  ;;  %v570_v55 = vadd.f32 %v562_v45, %v511_v41  ;;  %vm864_vm8 = vweird.f32 %v837_v38  ;;  %vm909_vm1 = vweird.f32 %v2023_v16 }
 0x1ba   : > { %v700_v25 = vpop.permute.xlu1 %699  ;;  %vm2042_vm10 = vcmp.eq.f32.partialorder %v868_v30, 8.507059e+37  ;;  %v871_v5 = vor.u32 1.1754944e-38, %v870_v17  ;;  %v913_v30 = vand.u32 2147483647, %v2023_v16 }
 0x1bb   : > { %1318 = vrcp.f32 %v2018_v54  ;;  %v612_v42 = vadd.f32 %v604_v49, %v570_v55  ;;  %v717_v36 = vsel %vm430_vm2, %v700_v25, 0.0  ;;  %v883_v40 = vand.u32 2147483647, %v2018_v54 }
 0x1bc   : > { %v725_v35 = vadd.f32 %v717_v36, %v684_v21  ;;  %1320 = vrcp.f32 %v2023_v16  ;;  %v885_v41 = vand.u32 2147483648, %v2018_v54  ;;  %vm879_vm13 = vweird.f32 %v2018_v54 }
 0x1bd   : > { %v644_v4 = vadd.f32 %v628_v11, %v612_v42  ;;  %1322 = vpow2.f32 %v1194_v50  ;;  %vm884_vm15 = vcmp.eq.f32.partialorder %v883_v40, 8.507059e+37 }
 0x1be   : > { %v1317_v1 = vpop.eup %1316  ;;  %v757_v57 = vadd.f32 %v740_v28, %v725_v35  ;;  %v886_v36 = vor.u32 1.1754944e-38, %v885_v41 }
 0x1bf   : > { %v661_v59 = vpop.permute.xlu0 %660  ;;  %v860_v6 = vmul.f32 %v1317_v1, %v837_v38  ;;  %vm865_vm9 = vweird.f32 %v1317_v1 }
 0x1c0   : > { %v798_v12 = vadd.f32 %v790_v61, %v757_v57  ;;  %v677_v9 = vsel %vm429_vm3, %v661_v59, 0.0  ;;  %vm866_vm11 = vmor %vm864_vm8, %vm865_vm9 }
 0x1c1   : > { %v1319_v14 = vpop.eup %1318  ;;  %v685_v20 = vadd.f32 %v677_v9, %v644_v4  ;;  %v861_v23 = vsub.f32 1.0, %v860_v6 }
 0x1c2   : > { %v810_v13 = vadd.f32 %v1905_v18, %v798_v12  ;;  %v771_v7 = vpop.permute.xlu1 %770  ;;  %v875_v10 = vmul.f32 %v1319_v14, %v2018_v54  ;;  %v2039_v8 = vpop.eup %1320  ;;  %vm880_vm12 = vweird.f32 %v1319_v14  ;;  %v915_v12 = vand.u32 2147483648, %v2023_v16 }
 0x1c3   : > { %v726_v60 = vadd.f32 %v718_v29, %v685_v20  ;;  %v789_v47 = vsel %vm429_vm3, %v771_v7, 0.0  ;;  %v862_v24 = vmul.f32 %v1317_v1, %v861_v23  ;;  %v1323_v43 = vpop.eup %1322  ;;  %v905_v55 = vmul.f32 %v2039_v8, %v2023_v16  ;;  %vm881_vm14 = vmor %vm879_vm13, %vm880_vm12 }
 0x1c4   : > { %v1197_v28 = vmul.f32 -1.442695, %v810_v13  ;;  %v797_v37 = vadd.f32 %v789_v47, %v1965_v3  ;;  %v876_v33 = vsub.f32 1.0, %v875_v10  ;;  %v2058_v0 = vadd.f32 1.0, %v1323_v43 }
 0x1c5   : > { %v863_v2 = vadd.f32 %v1317_v1, %v862_v24  ;;  %v758_v45 = vadd.f32 %v1818_v63, %v726_v60  ;;  %v906_v50 = vsub.f32 1.0, %v905_v55  ;;  %vm910_vm0 = vweird.f32 %v2039_v8 }
 0x1c6   : > { %1324 = vpow2.f32 %v1197_v28  ;;  %v809_v39 = vadd.f32 %v1905_v18, %v797_v37  ;;  %v877_v15 = vmul.f32 %v1319_v14, %v876_v33  ;;  %vm911_vm2 = vmor %vm909_vm1, %vm910_vm0  ;;  %v916_v13 = vor.u32 1.1754944e-38, %v915_v12  ;;  %v1341_v12 = vld [vmem:[%s1564_s21] sm:$0xff] }
 0x1c7   : > { %v775_v3 = vpop.permute.xlu0 %774  ;;  %v867_v48 = vsel %vm866_vm11, %v1317_v1, %v863_v2  ;;  %v907_v61 = vmul.f32 %v2039_v8, %v906_v50 }
 0x1c8   : > { %v1196_v49 = vmul.f32 -1.442695, %v809_v39  ;;  %v791_v21 = vsel %vm429_vm3, %v775_v3, 0.0  ;;  %v872_v38 = vsel %vm2042_vm10, %v871_v5, %v867_v48  ;;  %v878_v25 = vadd.f32 %v1319_v14, %v877_v15 }
 0x1c9   : > { %v799_v42 = vadd.f32 %v791_v21, %v758_v45  ;;  %995 = vperm.xlu2 %1293, %v872_v38   ;;  %vm914_vm3 = vcmp.eq.f32.partialorder %v913_v30, 8.507059e+37 }
 0x1ca   : > { %1326 = vpow2.f32 %v1196_v49  ;;  %v882_v63 = vsel %vm881_vm14, %v1319_v14, %v878_v25  ;;  %vm894_vm14 = vweird.f32 %v2058_v0 }
 0x1cb   : > { %v811_v54 = vadd.f32 %v1905_v18, %v799_v42  ;;  %v887_v35 = vsel %vm884_vm15, %v886_v36, %v882_v63  ;;  %1328 = vrcp.f32 %v2058_v0  ;;  %v908_v18 = vadd.f32 %v2039_v8, %v907_v61 }
 0x1cc   : > { %v1325_v1 = vpop.eup %1324  ;;  %1000 = vperm.xlu0 %1295, %v887_v35   ;;  %v900_v36 = vand.u32 2147483648, %v2058_v0 }
 0x1cd   : > { %v842_v62 = vadd.f32 1.0, %v1325_v1  ;;  %v1198_v57 = vmul.f32 -1.442695, %v811_v54  ;;  %v912_v17 = vsel %vm911_vm2, %v2039_v8, %v908_v18  ;;  %v898_v54 = vand.u32 2147483647, %v2058_v0 }
 0x1ce   : > { %v917_v60 = vsel %vm914_vm3, %v916_v13, %v912_v17 }
 0x1cf   : > { %1330 = vrcp.f32 %v842_v62  ;;  %v945_v37 = vand.u32 2147483648, %v842_v62  ;;  %vm939_vm5 = vweird.f32 %v842_v62  ;;  %v943_v8 = vand.u32 2147483647, %v842_v62 }
 0x1d0   : > { %v1327_v59 = vpop.eup %1326  ;;  %1332 = vpow2.f32 %v1198_v57  ;;  %v901_v57 = vor.u32 1.1754944e-38, %v900_v36  ;;  %vm899_vm3 = vcmp.eq.f32.partialorder %v898_v54, 8.507059e+37 }
 0x1d1   : > { %v841_v4 = vadd.f32 1.0, %v1327_v59  ;;  %1294 = vset.pattern.permute.xlu2 %v1418_v58  ;;  %v2066_v6 = vpop.eup %1328  ;;  %v946_v15 = vor.u32 1.1754944e-38, %v945_v37  ;;  %vm944_vm9 = vcmp.eq.f32.partialorder %v943_v8, 8.507059e+37  ;;  %v1338_v59 = vld [vmem:[%s2162_s6] ss:$0 sm:$0xff] }
 0x1d2   : > { %1041 = vperm.xlu2 %1294, %v872_v38   ;;  %v890_v29 = vmul.f32 %v2066_v6, %v2058_v0  ;;  %vm895_vm12 = vweird.f32 %v2066_v6 }
 0x1d3   : > { %1334 = vrcp.f32 %v841_v4  ;;  %v930_v33 = vand.u32 2147483648, %v841_v4  ;;  %v928_v5 = vand.u32 2147483647, %v841_v4  ;;  %vm924_vm8 = vweird.f32 %v841_v4  ;;  %vm896_vm0 = vmor %vm894_vm14, %vm895_vm12 }
 0x1d4   : > { %1297 = vset.pattern.permute.xlu0 %v1418_v58  ;;  %v891_v16 = vsub.f32 1.0, %v890_v29  ;;  %v1342_v29 = vld [vmem:[%s1553_s13 + $0x8] sm:$0xff] }
 0x1d5   : > { %v1331_v9 = vpop.eup %1330  ;;  %1045 = vperm.xlu0 %1297, %v887_v35   ;;  %v931_v45 = vor.u32 1.1754944e-38, %v930_v33  ;;  %vm929_vm11 = vcmp.eq.f32.partialorder %v928_v5, 8.507059e+37  ;;  %v981_v13 = vmul.f32 %v1342_v29, %v1338_v59 }
 0x1d6   : > { %v1333_v14 = vpop.eup %1332  ;;  %v935_v20 = vmul.f32 %v1331_v9, %v842_v62  ;;  %vm940_vm4 = vweird.f32 %v1331_v9  ;;  %v892_v39 = vmul.f32 %v2066_v6, %v891_v16 }
 0x1d7   : > { %v843_v23 = vadd.f32 1.0, %v1333_v14  ;;  %vm941_vm6 = vmor %vm939_vm5, %vm940_vm4 }
 0x1d8   : > { %v936_v7 = vsub.f32 1.0, %v935_v20  ;;  %v893_v42 = vadd.f32 %v2066_v6, %v892_v39 }
 0x1d9   : > { %v1335_v10 = vpop.eup %1334  ;;  %1336 = vrcp.f32 %v843_v23  ;;  %v960_v21 = vand.u32 2147483648, %v843_v23  ;;  %v958_v25 = vand.u32 2147483647, %v843_v23  ;;  %vm954_vm15 = vweird.f32 %v843_v23 }
 0x1da   : > { %1298 = vset.pattern.permute.xlu2 %v1417_v32  ;;  %v937_v47 = vmul.f32 %v1331_v9, %v936_v7  ;;  %v920_v24 = vmul.f32 %v1335_v10, %v841_v4  ;;  %vm925_vm7 = vweird.f32 %v1335_v10  ;;  %v897_v1 = vsel %vm896_vm0, %v2066_v6, %v893_v42  ;;  %v1339_v4 = vld [vmem:[%s1553_s13] sm:$0xff]  ;;  %v1343_v7 = vld [vmem:[%s1564_s21 + $0x8] sm:$0xff]  ;;  %s1206_s13 = sshll.u32 %s1482_s28, 6  ;;  %s1093_s28 = scalar_lea.sflag [#allocation3], %s284_s8 }
 0x1db   : > { %1010 = vperm.xlu2 %1298, %v917_v60   ;;  %vm926_vm10 = vmor %vm924_vm8, %vm925_vm7  ;;  %v961_v35 = vor.u32 1.1754944e-38, %v960_v21  ;;  %vm959_vm2 = vcmp.eq.f32.partialorder %v958_v25, 8.507059e+37  ;;  %v902_v61 = vsel %vm899_vm3, %v901_v57, %v897_v1  ;;  %v980_v18 = vmul.f32 %v1339_v4, %v1338_v59  ;;  %v1340_v6 = vld [vmem:[%s2161_s5] ss:$0 sm:$0xff]  ;;  %s1104_s19 = scalar_lea.hbm %s2163_s7, %s1206_s13 }
 0x1dc   : > { %v938_v28 = vadd.f32 %v1331_v9, %v937_v47  ;;  %v921_v11 = vsub.f32 1.0, %v920_v24  ;;  %s1107_s22 = sshll.u32 %s1104_s19, 4  ;;  %s1108_s22 = int_to_ptr.hbm [resolvable:$true] %s1107_s22 }
 0x1dd   : > { %1301 = vset.pattern.permute.xlu0 %v1417_v32  ;;  %s1358_s29 = sshra.s32 %s1108_s22, 4  ;;  %s1359_s29 = int_to_ptr.hbm [resolvable:$true] %s1358_s29 }
 0x1de   : > { %v922_v2 = vmul.f32 %v1335_v10, %v921_v11  ;;  %v942_v41 = vsel %vm941_vm6, %v1331_v9, %v938_v28  ;;  %v968_v9 = vmul.f32 %v1341_v12, %v1340_v6  ;;  %s1360_s9 = scalar_lea.hbm %s1359_s29, 64  ;;  %p1365_p0 = scmp.lt.s32.totalorder %s1359_s29, %s2163_s7 }
 0x1df   : > { %v1337_v40 = vpop.eup %1336  ;;  %v947_v48 = vsel %vm944_vm9, %v946_v15, %v942_v41  ;;  %p1361_p11 = scmp.ne.s32.totalorder %s1359_s29, %s1360_s9  ;;  %p1366_p1 = scmp.lt.s32.totalorder %s1364_s14, %s1360_s9 }
 0x1e0   : > { %v923_v43 = vadd.f32 %v1335_v10, %v922_v2  ;;  %v950_v3 = vmul.f32 %v1337_v40, %v843_v23  ;;  %vm955_vm13 = vweird.f32 %v1337_v40 }
 0x1e1   : > { %vm956_vm1 = vmor %vm954_vm15, %vm955_vm13  ;;  %p1362_p12 = pnand %p1361_p11, %p1499_p5  ;;  %p1367_p2 = por %p1366_p1, %p1365_p0 }
 0x1e2   : > { %v927_v55 = vsel %vm926_vm10, %v1335_v10, %v923_v43  ;;  %v951_v49 = vsub.f32 1.0, %v950_v3  ;;  %v969_v10 = vmul.f32 %v1343_v7, %v1340_v6 }
 0x1e3   : > { %1020 = vperm.xlu2 %1298, %v947_v48   ;;  %v932_v32 = vsel %vm929_vm11, %v931_v45, %v927_v55  ;;  %p1363_p13 = pneg %p1362_p12 }
 0x1e4   : > { %1015 = vperm.xlu1 %1296, %v932_v32   ;;  %v952_v38 = vmul.f32 %v1337_v40, %v951_v49 }
 0x1e5   : > { %p1368_p3 = pnand %p1367_p2, %p1363_p13 }
 0x1e6   : > { %v953_v63 = vadd.f32 %v1337_v40, %v952_v38 }
 0x1e8   : > { %v957_v50 = vsel %vm956_vm1, %v1337_v40, %v953_v63 }
 0x1e9   : > { %v962_v62 = vsel %vm959_vm2, %v961_v35, %v957_v50 }
 0x1ea   : > { %1025 = vperm.xlu0 %1301, %v962_v62  }
 0x1eb   : > { %1300 = vset.pattern.permute.xlu2 %v1418_v58 }
 0x1ec   : > { %1005 = vperm.xlu1 %1296, %v902_v61   ;;  %1053 = vperm.xlu2 %1300, %v917_v60  }
 0x1ee   : > { %v991_v0 = vpop.permute.xlu1 %990 }
 0x1ef   : > { %v1028_v14 = vmul.f32 %v991_v0, %v968_v9 }
 0x1f2   : > { %1302 = vset.pattern.permute.xlu0 %v1418_v58 }
 0x1f3   : > { %1065 = vperm.xlu0 %1302, %v962_v62  }
 0x1f4   : > { %1299 = vset.pattern.permute.xlu1 %v1418_v58  ;;  %1061 = vperm.xlu2 %1300, %v947_v48  }
 0x1f5   : > { %1049 = vperm.xlu1 %1299, %v902_v61  }
 0x1f7   : > { %v1038_v30 = vpop.permute.xlu1 %1037 }
 0x1f8   : > { %v1068_v20 = vmul.f32 %v1038_v30, %v980_v18 }
 0x1fa   : > { %v1076_v23 = vadd.f32 %v1068_v20, %v1028_v14 }
 0x1fc   : > { %1084 = vst [vmem:[%s2098_s16] sm:$0xff] %v1076_v23 }
 0x1fd   : > { %1057 = vperm.xlu1 %1299, %v932_v32  }
 0x223   : > { %v996_v17 = vpop.permute.xlu2 %995 }
 0x224   : > { %v1029_v60 = vmul.f32 %v996_v17, %v969_v10 }
 0x22c   : > { %v1042_v58 = vpop.permute.xlu2 %1041 }
 0x22d   : > { %v1069_v47 = vmul.f32 %v1042_v58, %v981_v13 }
 0x22f   : > { %v1077_v24 = vadd.f32 %v1069_v47, %v1029_v60 }
 0x231   : > { %1085 = vst [vmem:[%s2098_s16 + $0x8] sm:$0xff] %v1077_v24 }
 0x235   : > { %v1011_v16 = vpop.permute.xlu2 %1010 }
 0x236   : > { %v1032_v8 = vmul.f32 %v1011_v16, %v1597_v22 }
 0x23d   : > { %v1021_v28 = vpop.permute.xlu2 %1020 }
 0x23e   : > { %v1001_v37 = vpop.permute.xlu0 %1000  ;;  %v1034_v43 = vmul.f32 %v1021_v28, %v1681_v52 }
 0x23f   : > { %v1030_v5 = vmul.f32 %v1001_v37, %v1637_v34 }
 0x246   : > { %v1054_v11 = vpop.permute.xlu2 %1053 }
 0x247   : > { %v1072_v33 = vmul.f32 %v1054_v11, %v1587_v19  ;;  %v1046_v2 = vpop.permute.xlu0 %1045 }
 0x248   : > { %v1070_v40 = vmul.f32 %v1046_v2, %v1627_v31 }
 0x249   : > { %v1080_v41 = vadd.f32 %v1072_v33, %v1032_v8 }
 0x24a   : > { %v1078_v39 = vadd.f32 %v1070_v40, %v1030_v5 }
 0x24b   : > { %1088 = vst [vmem:[%s2098_s16 + $0x20] sm:$0xff] %v1080_v41 }
 0x24c   : > { %1086 = vst [vmem:[%s2098_s16 + $0x10] sm:$0xff] %v1078_v39 }
 0x24e   : > { %v1062_v15 = vpop.permute.xlu2 %1061 }
 0x24f   : > { %v1074_v3 = vmul.f32 %v1062_v15, %v1678_v51 }
 0x251   : > { %v1082_v45 = vadd.f32 %v1074_v3, %v1034_v43 }
 0x253   : > { %1090 = vst [vmem:[%s2098_s16 + $0x30] sm:$0xff] %v1082_v45 }
 0x256   : > { %v1016_v19 = vpop.permute.xlu1 %1015 }
 0x25c   : > { %v1026_v22 = vpop.permute.xlu0 %1025 }
 0x25d   : > { %v1035_v31 = vmul.f32 %v1026_v22, %v1691_v56  ;;  %v1033_v56 = vmul.f32 %v1016_v19, %v1614_v27 }
 0x25e   : > { %v1006_v34 = vpop.permute.xlu1 %1005 }
 0x25f   : > { %v1031_v32 = vmul.f32 %v1006_v34, %v1669_v46 }
 0x265   : > { %v1066_v48 = vpop.permute.xlu0 %1065 }
 0x266   : > { %v1075_v55 = vmul.f32 %v1066_v48, %v1684_v53 }
 0x267   : > { %v1050_v49 = vpop.permute.xlu1 %1049 }
 0x268   : > { %v1083_v21 = vadd.f32 %v1075_v55, %v1035_v31  ;;  %v1071_v51 = vmul.f32 %v1050_v49, %v1665_v44 }
 0x26a   : > { %1091 = vst [vmem:[%s2098_s16 + $0x38] sm:$0xff] %v1083_v21  ;;  %v1079_v52 = vadd.f32 %v1071_v51, %v1031_v32 }
 0x26c   : > { %1087 = vst [vmem:[%s2098_s16 + $0x18] sm:$0xff] %v1079_v52 }
 0x26f   : > { %v1058_v53 = vpop.permute.xlu1 %1057 }
 0x270   : > { %v1073_v46 = vmul.f32 %v1058_v53, %v1610_v26 }
 0x272   : > { %v1081_v38 = vadd.f32 %v1073_v46, %v1033_v56 }
 0x274   : > { %1089 = vst [vmem:[%s2098_s16 + $0x28] sm:$0xff] %v1081_v38 }
 0x275   : > { %1371 = shalt.err (!%p1368_p3)
}
 0x276   : > { %s1419_s8 = smov 128   ;;  %s1420_s16 = smov 8  }
 0x277   : > { %1239 = dma.vmem_to_hbm [thread:$0]  (%p1499_p5), %s1106_s20, 1024, %s1108_s22, %s1093_s28, %s1419_s8, %s1419_s8, %s1420_s16  }
 0x278 PF: > { %p1245_p4 = scmp.ge.s32.totalorder %s1406_s27, 2  ;;  %s1122_s21 = sand.u32 1, %s1394_s24  }
 0x279   : > { %s1123_s17 = scalar_lea.sflag [#allocation3], %s1122_s21 }
 0x27a   : > { %p1242_p7 = pnand %p1245_p4, %p1503_p6 }
 0x27c   : > { %p1243_p8 = pneg %p1242_p7 }
 0x27e   : > { %1389 = dma.done.wait (%p1243_p8), %s1123_s17, 1024  }
 0x27f   : > { %1391 = vsyncadd (%p1243_p8), %s1123_s17, 4294966272  ;;  %p17_p9 = scmp.ge.s32.totalorder %s1486_s30, 4   ;;  %s2168_s24 = smov %s1398_s25 }
 0x280   : > { %s2169_s25 = smov %s1402_s26  ;;  %s2170_s26 = smov %s1497_s10 }
 0x281   : > { %s2171_s27 = smov %s1486_s30  ;;  %19 = sbr.rel (!%p17_p9) target bundleno = 3 (0x3), region = 86 }
 0x286   :  { %1129 = vsyncpa [#allocation3], 1 }
 0x287   :  { %1131 = vsyncpa [#allocation3 + $0x1], 1 }

</bundles_post_ra>
